<compile_context>
chip_gen: v5e
topology: v5e:2x2
jax: 0.10.0
libtpu: 0.0.40
codegen_flags: <defaults>
</compile_context>

<pallas_src>
import functools

import jax
import jax.numpy as jnp
from jax import lax
from jax.experimental import pallas as pl
from jax.experimental.pallas import tpu as pltpu

NEG_INF = -1e30                      # stand-in for -nntrainer.typext.INF
VMEM_LIMIT = 32 * 1024 * 1024        # scoped-VMEM ceiling, safe on v5e/v6e/v7x
TILE_BUDGET = 20 * 1024 * 1024       # target resident tile footprint (pipeline headroom)


def _pick_tile(dim, candidates=(512, 256, 128)):
    """Largest candidate that evenly divides `dim`, else the full dim (no padding)."""
    for c in candidates:
        if dim % c == 0:
            return c
    return dim


# --------------------- (fused) linear: y[s] = x @ W[s] + b[s] --------------------- #

def _linear_kernel(x_ref, w_ref, b_ref, o_ref, acc_ref):
    # x: (tm, tk), w: (tk, tn), b: (1, tn), o: (tm, tn); K reduction is grid axis 3.
    @pl.when(pl.program_id(3) == 0)
    def _init():
        acc_ref[...] = jnp.zeros(acc_ref.shape, acc_ref.dtype)

    acc_ref[...] += jnp.dot(x_ref[...], w_ref[...],
                            preferred_element_type=jnp.float32)

    @pl.when(pl.program_id(3) == pl.num_programs(3) - 1)
    def _fin():
        o_ref[...] = (acc_ref[...] + b_ref[...]).astype(o_ref.dtype)


def fused_linear(x2d, w_s, b_s, out_dtype):
    """y[s] = x2d @ w_s[s] + b_s[s].

    x2d: (N, d_in)   (bf16 activations)
    w_s: (S, d_in, d_slot) bf16, b_s: (S, 1, d_slot) fp32.
    Returns (S, N, d_slot) in `out_dtype` — slot-major so the attention kernel can pull
    lane-dense (tile, D) blocks for q / k / v straight out of it (no splits, no copies).
    """
    n, d_in = x2d.shape
    s_slots, _, d_slot = w_s.shape
    tm = _pick_tile(n)
    tn = _pick_tile(d_slot)
    tk = _pick_tile(d_in)
    cost = pl.CostEstimate(
        flops=2 * n * d_in * s_slots * d_slot,
        transcendentals=0,
        bytes_accessed=(n * d_in * 2 + s_slots * d_in * d_slot * 2
                        + s_slots * d_slot * 4
                        + s_slots * n * d_slot * jnp.dtype(out_dtype).itemsize))
    return pl.pallas_call(
        _linear_kernel,
        out_shape=jax.ShapeDtypeStruct((s_slots, n, d_slot), out_dtype),
        grid_spec=pltpu.PrefetchScalarGridSpec(
            num_scalar_prefetch=0,
            grid=(s_slots, n // tm, d_slot // tn, d_in // tk),
            in_specs=[
                pl.BlockSpec((tm, tk), lambda s, i, j, k: (i, k)),
                pl.BlockSpec((None, tk, tn), lambda s, i, j, k: (s, k, j)),
                pl.BlockSpec((None, 1, tn), lambda s, i, j, k: (s, 0, j)),
            ],
            out_specs=pl.BlockSpec((None, tm, tn), lambda s, i, j, k: (s, i, j)),
            scratch_shapes=[pltpu.VMEM((tm, tn), jnp.float32)],
        ),
        compiler_params=pltpu.CompilerParams(
            dimension_semantics=("parallel", "parallel", "parallel", "arbitrary"),
            vmem_limit_bytes=VMEM_LIMIT),
        cost_estimate=cost,
    )(x2d, w_s, b_s)


# ------------------------ attention core (flash-style) ------------------------ #

def _mha_kernel(*refs, num_heads, d_head, has_bias):
    if has_bias:
        q_ref, k_ref, v_ref, bias_ref, o_ref, m_sc, l_sc, acc_sc = refs
    else:
        q_ref, k_ref, v_ref, o_ref, m_sc, l_sc, acc_sc = refs
        bias_ref = None

    kb = pl.program_id(2)

    @pl.when(kb == 0)
    def _init():
        m_sc[...] = jnp.full(m_sc.shape, -jnp.inf, m_sc.dtype)
        l_sc[...] = jnp.zeros(l_sc.shape, l_sc.dtype)
        acc_sc[...] = jnp.zeros(acc_sc.shape, acc_sc.dtype)

    # Lane-dense bf16 tiles; 1/sqrt(d_head) is already folded into Wq.
    q = q_ref[...]                                    # (tq, D) bf16
    k = k_ref[...]                                    # (tk, D) bf16
    v = v_ref[...]                                    # (tk, D) bf16
    if has_bias:
        bias = bias_ref[...].astype(jnp.float32)      # (tq, tk), loaded once per block

    for h in range(num_heads):
        lo, hi = h * d_head, (h + 1) * d_head
        # q_h @ k_h^T without materializing k.T (contract the last dim of both).
        s = lax.dot_general(q[:, lo:hi], k[:, lo:hi],
                            dimension_numbers=(((1,), (1,)), ((), ())),
                            preferred_element_type=jnp.float32)   # (tq, tk) fp32
        if has_bias:
            s = s + bias
        m_prev = m_sc[h]                                           # (tq, 1)
        m_new = jnp.maximum(m_prev, jnp.max(s, axis=-1, keepdims=True))
        alpha = jnp.exp(m_prev - m_new)
        p = jnp.exp(s - m_new)                                     # (tq, tk) fp32
        l_sc[h] = alpha * l_sc[h] + jnp.sum(p, axis=-1, keepdims=True)
        pv = jnp.dot(p.astype(v.dtype), v[:, lo:hi],               # bf16 x bf16 on MXU
                     preferred_element_type=jnp.float32)           # (tq, dh) fp32
        acc_sc[:, lo:hi] = alpha * acc_sc[:, lo:hi] + pv
        m_sc[h] = m_new

    @pl.when(kb == pl.num_programs(2) - 1)
    def _fin():
        # Exact reciprocal (divide) — runs once per q-tile, cost negligible.
        for h in range(num_heads):
            lo, hi = h * d_head, (h + 1) * d_head
            acc_sc[:, lo:hi] = acc_sc[:, lo:hi] / l_sc[h]
        # Single lane-dense (tq, D) store (no per-head masked partial stores).
        o_ref[...] = acc_sc[...].astype(o_ref.dtype)


def _attn_tiles(lq, lk, d, num_heads, has_bias, budget_bytes=TILE_BUDGET):
    """Pick (tq, tk), preferring 512, shrinking tk first to stay inside the VMEM budget."""
    tq = _pick_tile(lq, (512, 256, 128))
    tk = _pick_tile(lk, (512, 256, 128))

    def footprint(tq_, tk_):
        bf = 2  # bf16 bytes
        f = 2 * (tq_ * d + 2 * tk_ * d) * bf          # double-buffered q, k, v tiles
        f += 2 * tq_ * d * bf                         # double-buffered output tile
        if has_bias:
            f += 2 * tq_ * tk_ * bf                   # double-buffered bias tile
        f += tq_ * d * 4 + 2 * num_heads * tq_ * 4    # fp32 acc + m/l scratch
        return f

    def shrink(t, full):
        nt = t // 2
        if nt >= 128 and nt % 128 == 0 and full % nt == 0:
            return nt
        return t

    for _ in range(8):
        if footprint(tq, tk) <= budget_bytes:
            break
        new_tk = shrink(tk, lk)          # shrinking tk adds steps but no extra HBM traffic
        if new_tk != tk:
            tk = new_tk
            continue
        new_tq = shrink(tq, lq)
        if new_tq == tq:
            break
        tq = new_tq
    return tq, tk


def attention(q_src, k_src, v_src, bias, q_slot, k_slot, v_slot, *,
              num_heads, d_head, out_dtype=jnp.bfloat16):
    """q_src/k_src/v_src: (S, B, L, D) slot-major projections; *_slot picks q/k/v.

    For self-attention all three args are the SAME fused (3, B, L, D) QKV tensor (read from
    HBM once per block).  bias: optional (B, Lq, Lk) additive bf16 mask bias (0 / NEG_INF).
    Returns the context as (B, Lq, D), already lane-dense for the output projection.
    """
    _, b, lq, d = q_src.shape
    lk = k_src.shape[2]
    has_bias = bias is not None
    tq, tk = _attn_tiles(lq, lk, d, num_heads, has_bias)

    kernel = functools.partial(_mha_kernel, num_heads=num_heads, d_head=d_head,
                               has_bias=has_bias)

    in_specs = [
        pl.BlockSpec((None, None, tq, d), lambda bb, qi, ki, s=q_slot: (s, bb, qi, 0)),
        pl.BlockSpec((None, None, tk, d), lambda bb, qi, ki, s=k_slot: (s, bb, ki, 0)),
        pl.BlockSpec((None, None, tk, d), lambda bb, qi, ki, s=v_slot: (s, bb, ki, 0)),
    ]
    args = [q_src, k_src, v_src]
    if has_bias:
        in_specs.append(pl.BlockSpec((None, tq, tk), lambda bb, qi, ki: (bb, qi, ki)))
        args.append(bias)

    bytes_acc = 2 * (b * lq * d + 2 * (lq // tq) * b * lk * d + b * lq * d)
    if has_bias:
        bytes_acc += 2 * b * lq * lk
    cost = pl.CostEstimate(flops=4 * b * lq * lk * d,
                           transcendentals=b * num_heads * lq * lk,
                           bytes_accessed=bytes_acc)

    return pl.pallas_call(
        kernel,
        out_shape=jax.ShapeDtypeStruct((b, lq, d), out_dtype),
        grid_spec=pltpu.PrefetchScalarGridSpec(
            num_scalar_prefetch=0,
            grid=(b, lq // tq, lk // tk),
            in_specs=in_specs,
            out_specs=pl.BlockSpec((None, tq, d), lambda bb, qi, ki: (bb, qi, 0)),
            scratch_shapes=[
                pltpu.VMEM((num_heads, tq, 1), jnp.float32),   # running max
                pltpu.VMEM((num_heads, tq, 1), jnp.float32),   # running denominator
                pltpu.VMEM((tq, d), jnp.float32),              # fp32 accumulator (lane-dense)
            ],
        ),
        compiler_params=pltpu.CompilerParams(
            dimension_semantics=("parallel", "parallel", "arbitrary"),
            vmem_limit_bytes=VMEM_LIMIT),
        cost_estimate=cost,
    )(*args)


# -------------------------------- module wrapper -------------------------------- #

class MultiHeadAttentionPallas:
    def __init__(self, num_heads, d_model, dropout_prob, key):
        assert d_model % num_heads == 0
        self.num_heads = num_heads
        self.d_model = d_model
        self.d_head = d_model // num_heads
        self.dropout_prob = dropout_prob  # identity in eval mode

        keys = jax.random.split(key, 8)
        bound = 1.0 / float(d_model) ** 0.5  # nn.Linear default init range

        def lin_params(kw, kb):
            w = jax.random.uniform(kw, (d_model, d_model), jnp.float32, -bound, bound)
            b = jax.random.uniform(kb, (d_model,), jnp.float32, -bound, bound)
            return w, b

        # fp32 master weights (used by the pure-JAX reference).
        self.wq, self.bq = lin_params(keys[0], keys[1])
        self.wk, self.bk = lin_params(keys[2], keys[3])
        self.wv, self.bv = lin_params(keys[4], keys[5])
        self.wo, self.bo = lin_params(keys[6], keys[7])

        scale = 1.0 / float(self.d_head) ** 0.5
        bf = jnp.bfloat16
        wq_s, bq_s = self.wq * scale, self.bq * scale      # fold 1/sqrt(d_head) into Wq/bq

        # bf16 compute copies, stacked slot-major for the fused projection kernel.
        self.qkv_w = jnp.stack([wq_s, self.wk, self.wv], 0).astype(bf)        # (3, D, D)
        self.qkv_b = jnp.stack([bq_s, self.bk, self.bv], 0).reshape(3, 1, d_model)
        self.kv_w = jnp.stack([self.wk, self.wv], 0).astype(bf)               # (2, D, D)
        self.kv_b = jnp.stack([self.bk, self.bv], 0).reshape(2, 1, d_model)
        self.q_w = wq_s[None].astype(bf)
        self.q_b = bq_s.reshape(1, 1, d_model)
        self.k_w = self.wk[None].astype(bf)
        self.k_b = self.bk.reshape(1, 1, d_model)
        self.v_w = self.wv[None].astype(bf)
        self.v_b = self.bv.reshape(1, 1, d_model)
        self.o_w = self.wo[None].astype(bf)
        self.o_b = self.bo.reshape(1, 1, d_model)

    def __call__(self, query, key, value, mask_expanded=None):
        b, lq, d = query.shape
        lk = key.shape[1]
        h, dh = self.num_heads, self.d_head
        bf = jnp.bfloat16

        if query is key and key is value:
            # Self-attention: one fused QKV projection; attention reads q/k/v straight out
            # of the (3, B, L, D) slot-major output (no splits, no copies).
            qkv = fused_linear(query.reshape(b * lq, d).astype(bf),
                               self.qkv_w, self.qkv_b, bf).reshape(3, b, lq, d)
            q_src = k_src = v_src = qkv
            qs, ks, vs = 0, 1, 2
        elif key is value:
            # Cross-attention with shared K/V source: fused KV projection.
            q_p = fused_linear(query.reshape(b * lq, d).astype(bf),
                               self.q_w, self.q_b, bf).reshape(1, b, lq, d)
            kv = fused_linear(key.reshape(b * lk, d).astype(bf),
                              self.kv_w, self.kv_b, bf).reshape(2, b, lk, d)
            q_src, qs = q_p, 0
            k_src, ks = kv, 0
            v_src, vs = kv, 1
        else:
            q_p = fused_linear(query.reshape(b * lq, d).astype(bf),
                               self.q_w, self.q_b, bf).reshape(1, b, lq, d)
            k_p = fused_linear(key.reshape(b * lk, d).astype(bf),
                               self.k_w, self.k_b, bf).reshape(1, b, lk, d)
            v_p = fused_linear(value.reshape(b * lk, d).astype(bf),
                               self.v_w, self.v_b, bf).reshape(1, b, lk, d)
            q_src, k_src, v_src = q_p, k_p, v_p
            qs = ks = vs = 0

        # Mask as a bf16 additive bias (0 / NEG_INF); no-mask path compiles a bias-free kernel.
        bias = None
        if mask_expanded is not None:
            bias = jnp.where(mask_expanded, NEG_INF, 0.0).astype(bf)

        # TODO(synk): training-mode dropout on the attention weights is not implemented.
        ctx = attention(q_src, k_src, v_src, bias, qs, ks, vs,
                        num_heads=h, d_head=dh)                    # (B, Lq, D) bf16
        out = fused_linear(ctx.reshape(b * lq, d), self.o_w, self.o_b, jnp.float32)
        return out.reshape(b, lq, d)


# ------------------------------- pure-JAX reference ------------------------------ #

def reference_forward(m: MultiHeadAttentionPallas, q, k, v, mask=None):
    b, lq, d = q.shape
    lk = k.shape[1]
    h, dh = m.num_heads, m.d_head
    qp = q.reshape(-1, d) @ m.wq + m.bq
    kp = k.reshape(-1, d) @ m.wk + m.bk
    vp = v.reshape(-1, d) @ m.wv + m.bv
    qh = qp.reshape(b, lq, h, dh).transpose(0, 2, 1, 3)
    kh = kp.reshape(b, lk, h, dh).transpose(0, 2, 1, 3)
    vh = vp.reshape(b, lk, h, dh).transpose(0, 2, 1, 3)
    scores = jnp.einsum("bhqd,bhkd->bhqk", qh, kh) / jnp.sqrt(float(dh))
    if mask is not None:
        scores = jnp.where(mask[:, None, :, :], NEG_INF, scores)
    attn = jax.nn.softmax(scores, axis=-1)
    ctx = jnp.einsum("bhqk,bhkd->bhqd", attn, vh)
    ctx = ctx.transpose(0, 2, 1, 3).reshape(b, lq, d)
    return (ctx.reshape(-1, d) @ m.wo + m.bo).reshape(b, lq, d)


# --------------------------------------- main ------------------------------------- #

if __name__ == "__main__":
    num_heads = 4
    d_model = 32
    batch = 2
    query_len = 8
    key_len = 8

    root = jax.random.PRNGKey(0)
    k_params, k_q, k_k, k_v, k_m = jax.random.split(root, 5)

    mha = MultiHeadAttentionPallas(num_heads, d_model, dropout_prob=0.1, key=k_params)

    query = jax.random.normal(k_q, (batch, query_len, d_model), jnp.float32)
    key = jax.random.normal(k_k, (batch, key_len, d_model), jnp.float32)
    value = jax.random.normal(k_v, (batch, key_len, d_model), jnp.float32)
    # boolean mask: True -> position is masked out
    mask_expanded = jax.random.bernoulli(k_m, 0.2, (batch, query_len, key_len))

    tol = dict(atol=3e-2, rtol=3e-2)  # bf16 weights/activations on the MXU (fp32 reference)

    # Cross-attention, separate K/V sources (separate projections).
    out_x = jax.block_until_ready(mha(query, key, value, mask_expanded))
    ref_x = reference_forward(mha, query, key, value, mask_expanded)
    assert out_x.shape == (batch, query_len, d_model)
    assert jnp.allclose(out_x, ref_x, **tol), "cross-attention mismatch vs. reference"

    # Cross-attention with key is value (fused KV projection path).
    out_kv = jax.block_until_ready(mha(query, key, key, mask_expanded))
    ref_kv = reference_forward(mha, query, key, key, mask_expanded)
    assert jnp.allclose(out_kv, ref_kv, **tol), "fused-KV cross-attention mismatch"

    # Self-attention (fused QKV projection path).
    out_s = jax.block_until_ready(mha(query, query, query, mask_expanded))
    ref_s = reference_forward(mha, query, query, query, mask_expanded)
    assert jnp.allclose(out_s, ref_s, **tol), "self-attention (fused QKV) mismatch"

    # No-mask path (bias-free attention kernel variant).
    out_n = jax.block_until_ready(mha(query, key, value, None))
    ref_n = reference_forward(mha, query, key, value, None)
    assert jnp.allclose(out_n, ref_n, **tol), "unmasked mismatch vs. reference"

    print("KERNEL_OK")
</pallas_src>

<mosaic_0001>
module attributes {stable_mosaic.version = 11 : i64} {
  func.func @_linear_kernel(%arg0: i32, %arg1: i32, %arg2: i32, %arg3: i32, %arg4: memref<16x32xbf16, #tpu.memory_space<vmem>>, %arg5: memref<1x32x32xbf16, #tpu.memory_space<vmem>>, %arg6: memref<1x1x32xf32, #tpu.memory_space<vmem>>, %arg7: memref<1x16x32xbf16, #tpu.memory_space<vmem>>, %arg8: memref<16x32xf32, #tpu.memory_space<vmem>>) attributes {dimension_semantics = [#tpu.dimension_semantics<parallel>, #tpu.dimension_semantics<parallel>, #tpu.dimension_semantics<parallel>, #tpu.dimension_semantics<arbitrary>], iteration_bounds = array<i64: 1, 1, 1, 1>, scalar_prefetch = 0 : i64, scratch_operands = 1 : i64, tpu.core_type = #tpu.core_type<tc>, window_params = [{transform_indices = @transform_0, window_bounds = array<i64: 16, 32>}, {transform_indices = @transform_1, window_bounds = array<i64: 1, 32, 32>}, {transform_indices = @transform_2, window_bounds = array<i64: 1, 1, 32>}, {transform_indices = @transform_3, window_bounds = array<i64: 1, 16, 32>}]} {
    %c0_i32 = arith.constant 0 : i32
    %0 = arith.cmpi eq, %arg3, %c0_i32 : i32
    %1 = arith.extui %0 : i1 to i32
    %c0_i32_0 = arith.constant 0 : i32
    %2 = arith.cmpi ne, %1, %c0_i32_0 : i32
    scf.if %2 {
      %cst_11 = arith.constant 0.000000e+00 : f32
      %13 = vector.broadcast %cst_11 : f32 to vector<16x32xf32>
      %c0_12 = arith.constant 0 : index
      %c0_13 = arith.constant 0 : index
      %14 = vector.load %arg8[%c0_12, %c0_13] : memref<16x32xf32, #tpu.memory_space<vmem>>, vector<16x32xf32>
      tpu.vector_store %arg8[%c0_12, %c0_13], %13 {strides = array<i32>} : memref<16x32xf32, #tpu.memory_space<vmem>>, vector<16x32xf32>,
    } else {
    }
    %c0 = arith.constant 0 : index
    %c0_1 = arith.constant 0 : index
    %3 = vector.load %arg8[%c0, %c0_1] : memref<16x32xf32, #tpu.memory_space<vmem>>, vector<16x32xf32>
    %c0_2 = arith.constant 0 : index
    %c0_3 = arith.constant 0 : index
    %4 = vector.load %arg4[%c0_2, %c0_3] : memref<16x32xbf16, #tpu.memory_space<vmem>>, vector<16x32xbf16>
    %c0_4 = arith.constant 0 : index
    %c0_5 = arith.constant 0 : index
    %c0_6 = arith.constant 0 : index
    %5 = vector.load %arg5[%c0_4, %c0_5, %c0_6] : memref<1x32x32xbf16, #tpu.memory_space<vmem>>, vector<1x32x32xbf16>
    %6 = vector.shape_cast %5 : vector<1x32x32xbf16> to vector<32x32xbf16>
    %cst = arith.constant dense<0.000000e+00> : vector<16x32xf32>
    %7 = tpu.matmul %4, %6, %cst {dimension_numbers = #tpu.dot_dimension_numbers<[1], [0], [0], [1], [0, 0, 1, 1], [], []>} : vector<16x32xbf16>, vector<32x32xbf16>, vector<16x32xf32> -> vector<16x32xf32>
    %8 = arith.addf %3, %7 : vector<16x32xf32>
    %c0_7 = arith.constant 0 : index
    %c0_8 = arith.constant 0 : index
    %9 = vector.load %arg8[%c0_7, %c0_8] : memref<16x32xf32, #tpu.memory_space<vmem>>, vector<16x32xf32>
    tpu.vector_store %arg8[%c0_7, %c0_8], %8 {strides = array<i32>} : memref<16x32xf32, #tpu.memory_space<vmem>>, vector<16x32xf32>,
    %c0_i32_9 = arith.constant 0 : i32
    %10 = arith.cmpi eq, %arg3, %c0_i32_9 : i32
    %11 = arith.extui %10 : i1 to i32
    %c0_i32_10 = arith.constant 0 : i32
    %12 = arith.cmpi ne, %11, %c0_i32_10 : i32
    scf.if %12 {
      %c0_11 = arith.constant 0 : index
      %c0_12 = arith.constant 0 : index
      %13 = vector.load %arg8[%c0_11, %c0_12] : memref<16x32xf32, #tpu.memory_space<vmem>>, vector<16x32xf32>
      %c0_13 = arith.constant 0 : index
      %c0_14 = arith.constant 0 : index
      %c0_15 = arith.constant 0 : index
      %14 = vector.load %arg6[%c0_13, %c0_14, %c0_15] : memref<1x1x32xf32, #tpu.memory_space<vmem>>, vector<1x1x32xf32>
      %15 = vector.shape_cast %14 : vector<1x1x32xf32> to vector<1x32xf32>
      %16 = vector.broadcast %15 : vector<1x32xf32> to vector<16x32xf32>
      %17 = arith.addf %13, %16 : vector<16x32xf32>
      %18 = arith.truncf %17 : vector<16x32xf32> to vector<16x32xbf16>
      %c0_16 = arith.constant 0 : index
      %c0_17 = arith.constant 0 : index
      %c0_18 = arith.constant 0 : index
      %19 = vector.load %arg7[%c0_16, %c0_17, %c0_18] : memref<1x16x32xbf16, #tpu.memory_space<vmem>>, vector<1x16x32xbf16>
      %20 = vector.shape_cast %19 : vector<1x16x32xbf16> to vector<16x32xbf16>
      %21 = vector.shape_cast %18 : vector<16x32xbf16> to vector<1x16x32xbf16>
      tpu.vector_store %arg7[%c0_16, %c0_17, %c0_18], %21 {strides = array<i32>} : memref<1x16x32xbf16, #tpu.memory_space<vmem>>, vector<1x16x32xbf16>,
    } else {
    }
    return
  }
  func.func @transform_0(%arg0: i32, %arg1: i32, %arg2: i32, %arg3: i32) -> (i32, i32) {
    %c0_i32 = arith.constant 0 : i32
    return %arg1, %arg3 : i32, i32
  }
  func.func @transform_1(%arg0: i32, %arg1: i32, %arg2: i32, %arg3: i32) -> (i32, i32, i32) {
    %c0_i32 = arith.constant 0 : i32
    return %arg0, %arg3, %arg2 : i32, i32, i32
  }
  func.func @transform_2(%arg0: i32, %arg1: i32, %arg2: i32, %arg3: i32) -> (i32, i32, i32) {
    %c0_i32 = arith.constant 0 : i32
    %c0_i32_0 = arith.constant 0 : i32
    return %arg0, %c0_i32, %arg2 : i32, i32, i32
  }
  func.func @transform_3(%arg0: i32, %arg1: i32, %arg2: i32, %arg3: i32) -> (i32, i32, i32) {
    %c0_i32 = arith.constant 0 : i32
    return %arg0, %arg1, %arg2 : i32, i32, i32
  }
}

</mosaic_0001>

<bundles_post_ra>
// kernel: tpu_custom_call.1
= control target key start
LH: loop header
LB: loop body
LE: loop exit
PB: predicated region body
PF: predicated region fallthrough
CT: control target
= control target key end

     0   :  { %8 = vsyncpa [#allocation4], 0  ;;  %s291_s0 = inlined_call_operand.hbm [shape: bf16[16,32], index: 0, kind: input, shape index: {}]   ;;  %s292_s1 = inlined_call_operand.hbm [shape: bf16[1,32,32], index: 1, kind: input, shape index: {}]   ;;  %s293_s2 = inlined_call_operand.vmem [shape: f32[1,1,32], index: 2, kind: input, shape index: {}]   ;;  %s294_s3 = inlined_call_operand.hbm [shape: bf16[1,16,32], index: 3, kind: output, shape index: {}]  }
   0x1   :  { %9 = vsyncpa [#allocation7], 0 }
   0x2   :  { %10 = vsyncpa [#allocation5], 0  ;;  %s15_s14 = sshll.u32 %s291_s0, 4  ;;  %s239_s15 = smov [#allocation3]   ;;  %s16_s14 = int_to_ptr.hbm [resolvable:$true] %s15_s14 }
   0x3   :  { %s17_s16 = sshll.u32 %s239_s15, 4  ;;  %s28_s19 = sshll.u32 %s292_s1, 4  ;;  %s18_s16 = int_to_ptr.vmem [resolvable:$true] %s17_s16  ;;  %s29_s19 = int_to_ptr.hbm [resolvable:$true] %s28_s19 }
   0x4   :  { %s240_s20 = smov 64   ;;  %s241_s21 = smov 4  }
   0x5   :  { %23 = dma.hbm_to_vmem [thread:$0]  %s16_s14, 128, %s18_s16, [#allocation4], %s240_s20, %s240_s20, %s241_s21  }
   0x6   :  { %s242_s22 = smov [#allocation6]  }
   0x7   :  { %s30_s23 = sshll.u32 %s242_s22, 4  ;;  %s31_s23 = int_to_ptr.vmem [resolvable:$true] %s30_s23 }
   0x8   :  { %36 = dma.hbm_to_vmem [thread:$0]  %s29_s19, 256, %s31_s23, [#allocation7], %s240_s20, %s240_s20, %s241_s21  }
   0x9   :  { %233 = dma.done.wait [#allocation4], 128  }
   0xa   :  { %234 = vsyncadd [#allocation4], 4294967168 }
   0xb   :  { %235 = dma.done.wait [#allocation7], 256  }
   0xc   :  { %236 = vsyncadd [#allocation7], 4294967040  ;;  %vm52_vm0 = vcmask 261120   ;;  %v243_v0 = vmov 0.0   ;;  %v153_v1 = vld [vmem:[#allocation6 + $0x8] sm:$0xff]  ;;  %v152_v2 = vld [vmem:[#allocation6] sm:$0xff] }
   0xd   :  { %53 = vst.msk [vmem:[#allocation2] sm:$0xff] %vm52_vm0, %v243_v0  ;;  %90 = vmatpush.bf16.msra.mxu0 %v153_v1  ;;  %v151_v3 = vld [vmem:[#allocation3] sm:$0xff]  ;;  %v160_v8 = vld [vmem:[%s293_s2] ss:$0 sm:$0xff]  ;;  %vm115_vm1 = vcmask 257024   ;;  %s244_s24 = smov [#allocation8]  }
   0xe   :  { %54 = vst.msk [vmem:[#allocation2 + $0x8] sm:$0xff] %vm52_vm0, %v243_v0  ;;  %s122_s25 = sshll.u32 %s244_s24, 4  ;;  %s124_s28 = sshll.u32 %s294_s3, 4  ;;  %s123_s25 = int_to_ptr.vmem [resolvable:$true] %s122_s25  ;;  %s125_s28 = int_to_ptr.hbm [resolvable:$true] %s124_s28 }
  0x11   :  { %91 = vmatpush.bf16.msra.mxu0 %v152_v2 }
  0x14   :  { %150 = vmatmul.msk.bf16.vlgmr.msra.gmra.mxu0 %vm52_vm0, %v151_v3  ;;  %v55_v4 = vld [vmem:[#allocation2] sm:$0xff] }
  0x15   :  { %v56_v7 = vld [vmem:[#allocation2 + $0x8] sm:$0xff] }
  0x91   :  { %v93_v5 = vpop.f32.mrf.mxu0 }
  0x92   :  { %v98_v6 = vadd.f32 %v93_v5, %v55_v4 }
  0x94   :  { %100 = vst.msk [vmem:[#allocation2] sm:$0xff] %vm52_vm0, %v98_v6 }
  0x99   :  { %v95_v9 = vpop.f32.mrf.mxu0 }
  0x9a   :  { %v99_v10 = vadd.f32 %v95_v9, %v56_v7 }
  0x9b   :  { %v105_v11 = vld [vmem:[#allocation2] sm:$0xff] }
  0x9c   :  { %101 = vst.msk [vmem:[#allocation2 + $0x8] sm:$0xff] %vm52_vm0, %v99_v10  ;;  %v111_v12 = vadd.f32 %v160_v8, %v105_v11 }
  0x9e   :  { %v113_v13 = vpack.c.bf16 %v111_v12, %v111_v12 }
  0xa0   :  { %116 = vst.msk [vmem:[#allocation8] sm:$0xf] %vm115_vm1, %v113_v13 }
  0xa3   :  { %v106_v14 = vld [vmem:[#allocation2 + $0x8] sm:$0xff] }
  0xa4   :  { %v112_v15 = vadd.f32 %v160_v8, %v106_v14 }
  0xa6   :  { %v114_v16 = vpack.c.bf16 %v112_v15, %v112_v15 }
  0xa8   :  { %117 = vst.msk [vmem:[#allocation8 + $0x4] sm:$0xf] %vm115_vm1, %v114_v16 }
  0xa9   :  { %130 = dma.vmem_to_hbm [thread:$0]  %s123_s25, 128, %s125_s28, [#allocation5], %s240_s20, %s240_s20, %s241_s21  }
  0xaa   :  { %237 = dma.done.wait [#allocation5], 128  }
  0xab   :  { %238 = vsyncadd [#allocation5], 4294967168 }
  0xac   :  { %135 = vsyncpa [#allocation4], 1 }
  0xad   :  { %136 = vsyncpa [#allocation7], 1 }
  0xae   :  { %137 = vsyncpa [#allocation5], 1 }

</bundles_post_ra>
